<compile_context>
chip_gen: v5e
topology: v5e:2x2
jax: 0.10.0
libtpu: 0.0.40
codegen_flags: <defaults>
</compile_context>

<pallas_src>
import jax
import jax.numpy as jnp
from jax.experimental import pallas as pl
from jax.experimental.pallas import tpu as pltpu


def _round_up(x, m):
    return -(-x // m) * m


def _pick_chunk(dim, max_chunk, multiple):
    """Largest divisor of `dim` <= max_chunk that is a multiple of `multiple`;
    falls back to the full dim (full-extent block is always legal)."""
    if dim <= max_chunk:
        return dim
    cand = (max_chunk // multiple) * multiple
    while cand >= multiple:
        if dim % cand == 0:
            return cand
        cand -= multiple
    return dim


def _vmem_capacity_bytes():
    """Physical per-core VMEM (64 MiB on v7x, 128 MiB on v5e/v6e)."""
    try:
        cap = getattr(pltpu.get_tpu_info(), "vmem_capacity_bytes", None)
        if cap:
            return int(cap)
    except Exception:
        pass
    return 64 * 1024 * 1024   # conservative default (v7x per-TC VMEM)


def _make_mlp_kernel(B, TT, mt_pad, hc, nk):
    """o = tanh(x @ W1 + b1) @ W2 + b2, hidden dim processed in `nk` chunks of `hc`."""

    def kernel(x_ref, w1_ref, b1_ref, w2_ref, b2_ref, o_ref):
        # (B, TT, asr) -> (B*TT, asr): fold batch into the MXU M dimension.
        x = x_ref[...].reshape(B * TT, x_ref.shape[-1])
        acc = None
        for k in range(nk):                               # static, small chunk count
            lo, hi = k * hc, (k + 1) * hc
            h = jnp.dot(x, w1_ref[:, lo:hi], preferred_element_type=jnp.float32)
            h = jnp.tanh(h + b1_ref[:, lo:hi])             # f32 bias add + f32 tanh (EUP)
            # TODO(synk): Dropout(0.2) is identity at inference; training-mode
            # stochastic masking (pltpu.prng_random_bits) intentionally omitted.
            p = jnp.dot(h.astype(w2_ref.dtype), w2_ref[lo:hi, :],
                        preferred_element_type=jnp.float32)
            acc = p if acc is None else acc + p            # local f32 value, no scratch
        y = acc + b2_ref[...]                              # f32 bias add
        # Scatter batches into the lane-dense (TT, B*mt_pad) output slab; every store
        # is a full-sublane, 128-aligned, unmasked vst.
        for b in range(B):
            o_ref[:, b * mt_pad:(b + 1) * mt_pad] = (
                y[b * TT:(b + 1) * TT, :].astype(o_ref.dtype))

    return kernel


def mlp_adapter_forward(ASR_output, ASR_tokens, params, src_pad=1,
                        compute_dtype=jnp.bfloat16, out_dtype=None,
                        row_tile=512, hid_chunk=2048):
    """Reproduces MLPAdapter.forward (inference semantics for dropout)."""
    w1, b1, w2, b2 = params["w1"], params["b1"], params["w2"], params["b2"]
    B, T, asr_dim = ASR_output.shape
    hid = w1.shape[1]
    mt_dim = w2.shape[1]

    compute_dtype = jnp.dtype(compute_dtype)
    out_dtype = jnp.dtype(ASR_output.dtype if out_dtype is None else out_dtype)

    # Lane-dense output: zero-pad MT_dim to a multiple of 128.
    mt_pad = _round_up(mt_dim, 128)

    # Activations / weights in compute dtype; biases stay f32 (added to f32 acc).
    # TODO(synk): an fp8 weight path (bf16 activations) would ~2x MXU rate on v7x.
    x = ASR_output.astype(compute_dtype)
    w1 = w1.astype(compute_dtype)
    w2 = w2.astype(compute_dtype)
    b1 = b1.reshape(1, hid).astype(jnp.float32)
    b2 = b2.reshape(1, mt_dim).astype(jnp.float32)
    if mt_pad != mt_dim:
        w2 = jnp.pad(w2, ((0, 0), (0, mt_pad - mt_dim)))
        b2 = jnp.pad(b2, ((0, 0), (0, mt_pad - mt_dim)))

    # Row tiling: B folded into M, TT time steps per grid step, ~row_tile rows total.
    # TT respects the packed-sublane quantum of the compute dtype.
    sub = {4: 8, 2: 16, 1: 32}.get(compute_dtype.itemsize, 8)
    tt = max(sub, (row_tile // max(B, 1)) // sub * sub)
    tt = min(tt, _round_up(T, sub))
    T_pad = _round_up(T, tt)
    nt = T_pad // tt
    if T_pad != T:
        x = jnp.pad(x, ((0, 0), (0, T_pad - T), (0, 0)))

    hc = _pick_chunk(hid, hid_chunk, 128)   # hidden-dim chunk inside the kernel
    nk = hid // hc
    rows = B * tt

    # VMEM budget: double-buffered x/out tiles + single-buffered resident weights
    # + live f32 intermediates; capped at this generation's physical VMEM.
    c_isz, o_isz = compute_dtype.itemsize, out_dtype.itemsize
    vmem_need = (2 * rows * asr_dim * c_isz                 # x tile (x2 pipeline bufs)
                 + 2 * rows * mt_pad * o_isz                # out tile (x2 pipeline bufs)
                 + (asr_dim * hid + hid * mt_pad) * c_isz   # W1/W2, single-buffered
                 + (hid + mt_pad) * 4                       # b1/b2 (f32)
                 + rows * hc * (4 + c_isz)                  # tanh intermediate + cast
                 + rows * mt_pad * 4                        # f32 accumulator
                 + (2 << 20))                               # slack
    vmem_limit = int(min(max(vmem_need, 8 << 20),
                         _vmem_capacity_bytes() - (4 << 20)))

    n = B * T
    cost = pl.CostEstimate(
        flops=2 * n * asr_dim * hid + 2 * n * hid * mt_pad,
        transcendentals=n * hid,
        bytes_accessed=(n * asr_dim * c_isz
                        + (asr_dim * hid + hid * mt_pad) * c_isz
                        + (hid + mt_pad) * 4
                        + n * mt_pad * o_isz),
    )

    def _run(resident):
        wkw = {"pipeline_mode": resident} if resident is not None else {}
        grid_spec = pltpu.PrefetchScalarGridSpec(
            num_scalar_prefetch=0,
            grid=(nt,),
            in_specs=[
                pl.BlockSpec((B, tt, asr_dim), lambda t: (0, t, 0)),       # x tile
                pl.BlockSpec((asr_dim, hid), lambda t: (0, 0), **wkw),     # W1 resident
                pl.BlockSpec((1, hid), lambda t: (0, 0), **wkw),           # b1 resident
                pl.BlockSpec((hid, mt_pad), lambda t: (0, 0), **wkw),      # W2 resident
                pl.BlockSpec((1, mt_pad), lambda t: (0, 0), **wkw),        # b2 resident
            ],
            out_specs=pl.BlockSpec((tt, B * mt_pad), lambda t: (t, 0)),    # lane-dense
        )
        return pl.pallas_call(
            _make_mlp_kernel(B, tt, mt_pad, hc, nk),
            out_shape=jax.ShapeDtypeStruct((T_pad, B * mt_pad), out_dtype),
            grid_spec=grid_spec,
            compiler_params=pltpu.CompilerParams(
                dimension_semantics=("parallel",),
                vmem_limit_bytes=vmem_limit,
            ),
            cost_estimate=cost,
        )(x, w1, b1, w2, b2)

    try:
        # Single-buffer the VMEM-resident weights (DMA'd once; a second pipeline
        # buffer would only waste VMEM -- critical on v7x's 64 MiB).
        out = _run(pl.Buffered(1))
    except Exception:
        out = _run(None)   # fallback: default double-buffering (still correct)

    # (T_pad, B*mt_pad) -> (T, B, MT_dim): free reshape + (possibly trivial) slice;
    # already in fairseq (T, B, C) order -- no XLA transpose round trip.
    adapter_output = out.reshape(T_pad, B, mt_pad)[:T, :, :mt_dim]

    encoder_padding_mask = ASR_tokens == src_pad
    return {
        "encoder_out": [adapter_output],
        "encoder_padding_mask": [encoder_padding_mask],
        "encoder_embedding": [],
        "encoder_states": [],
        "src_tokens": [],
        "src_lengths": [],
    }


def init_params(key, ASR_dim, MT_dim, dtype=jnp.float32):
    """Deterministic synthetic parameters (shapes match the nn.Linear layers)."""
    k1, k2, k3, k4 = jax.random.split(key, 4)
    hid = ASR_dim * 4
    # nn.Linear stores weight as (out, in); we keep (in, out) for x @ W.
    w1 = jax.random.normal(k1, (ASR_dim, hid), dtype) * (1.0 / jnp.sqrt(ASR_dim))
    b1 = jax.random.normal(k2, (1, hid), dtype) * 0.01
    w2 = jax.random.normal(k3, (hid, MT_dim), dtype) * (1.0 / jnp.sqrt(hid))
    b2 = jax.random.normal(k4, (1, MT_dim), dtype) * 0.01
    return {"w1": w1, "b1": b1, "w2": w2, "b2": b2}


if __name__ == "__main__":
    key = jax.random.PRNGKey(0)
    k_x, k_tok, k_p = jax.random.split(key, 3)

    B, T = 2, 16
    ASR_dim, MT_dim = 64, 128

    ASR_output = jax.random.normal(k_x, (B, T, ASR_dim), jnp.float32)
    ASR_tokens = jax.random.randint(k_tok, (B, T), 0, 5, dtype=jnp.int32)
    params = init_params(k_p, ASR_dim, MT_dim)

    def reference(xx, p):
        return (jnp.tanh(xx @ p["w1"] + p["b1"]) @ p["w2"] + p["b2"]).transpose(1, 0, 2)

    ref = reference(ASR_output, params)

    # 1) f32 compute path (tight tolerance).
    out = mlp_adapter_forward(ASR_output, ASR_tokens, params, src_pad=1,
                              compute_dtype=jnp.float32)
    enc = out["encoder_out"][0]
    mask = out["encoder_padding_mask"][0]
    jax.block_until_ready(enc)
    jax.block_until_ready(mask)
    assert enc.shape == (T, B, MT_dim)
    assert mask.shape == (B, T)
    assert jnp.array_equal(mask, ASR_tokens == 1)
    assert jnp.allclose(enc, ref, atol=1e-4, rtol=1e-4)

    # 2) default bf16 compute path (f32 accumulation, f32 output), looser tolerance.
    out_bf = mlp_adapter_forward(ASR_output, ASR_tokens, params, src_pad=1)
    enc_bf = out_bf["encoder_out"][0]
    jax.block_until_ready(enc_bf)
    assert enc_bf.dtype == ASR_output.dtype
    assert jnp.allclose(enc_bf, ref, atol=1.5e-1, rtol=1e-1)

    # 3) MT_dim not a multiple of 128 and T not a multiple of the row tile:
    #    exercises the zero-padded lane-dense output and the padded-T path.
    T2, MT2 = 12, 64
    x2 = jax.random.normal(jax.random.PRNGKey(2), (B, T2, ASR_dim), jnp.float32)
    tok2 = jax.random.randint(jax.random.PRNGKey(3), (B, T2), 0, 5, dtype=jnp.int32)
    params2 = init_params(jax.random.PRNGKey(1), ASR_dim, MT2)
    out2 = mlp_adapter_forward(x2, tok2, params2, src_pad=1,
                               compute_dtype=jnp.float32)
    enc2 = out2["encoder_out"][0]
    jax.block_until_ready(enc2)
    ref2 = reference(x2, params2)
    assert enc2.shape == (T2, B, MT2)
    assert jnp.allclose(enc2, ref2, atol=1e-4, rtol=1e-4)

    print("KERNEL_OK")
</pallas_src>

<mosaic_0001>
module attributes {stable_mosaic.version = 11 : i64} {
  func.func @kernel(%arg0: i32, %arg1: memref<2x16x64xf32, #tpu.memory_space<vmem>>, %arg2: memref<64x256xf32, #tpu.memory_space<vmem>>, %arg3: memref<1x256xf32, #tpu.memory_space<vmem>>, %arg4: memref<256x128xf32, #tpu.memory_space<vmem>>, %arg5: memref<1x128xf32, #tpu.memory_space<vmem>>, %arg6: memref<16x256xf32, #tpu.memory_space<vmem>>) attributes {dimension_semantics = [#tpu.dimension_semantics<parallel>], iteration_bounds = array<i64: 1>, scalar_prefetch = 0 : i64, scratch_operands = 0 : i64, tpu.core_type = #tpu.core_type<tc>, window_params = [{transform_indices = @transform_0, window_bounds = array<i64: 2, 16, 64>}, {pipeline_mode = #tpu.pipeline_mode<synchronous>, transform_indices = @transform_1, window_bounds = array<i64: 64, 256>}, {pipeline_mode = #tpu.pipeline_mode<synchronous>, transform_indices = @transform_2, window_bounds = array<i64: 1, 256>}, {pipeline_mode = #tpu.pipeline_mode<synchronous>, transform_indices = @transform_3, window_bounds = array<i64: 256, 128>}, {pipeline_mode = #tpu.pipeline_mode<synchronous>, transform_indices = @transform_4, window_bounds = array<i64: 1, 128>}, {transform_indices = @transform_5, window_bounds = array<i64: 16, 256>}]} {
    %c0 = arith.constant 0 : index
    %c0_0 = arith.constant 0 : index
    %c0_1 = arith.constant 0 : index
    %0 = vector.load %arg1[%c0, %c0_0, %c0_1] : memref<2x16x64xf32, #tpu.memory_space<vmem>>, vector<2x16x64xf32>
    %1 = vector.shape_cast %0 : vector<2x16x64xf32> to vector<32x64xf32>
    %c0_2 = arith.constant 0 : index
    %c0_3 = arith.constant 0 : index
    %2 = vector.load %arg2[%c0_2, %c0_3] : memref<64x256xf32, #tpu.memory_space<vmem>>, vector<64x256xf32>
    %cst = arith.constant dense<0.000000e+00> : vector<32x256xf32>
    %3 = tpu.matmul %1, %2, %cst {dimension_numbers = #tpu.dot_dimension_numbers<[1], [0], [0], [1], [0, 0, 1, 1], [], []>} : vector<32x64xf32>, vector<64x256xf32>, vector<32x256xf32> -> vector<32x256xf32>
    %c0_4 = arith.constant 0 : index
    %c0_5 = arith.constant 0 : index
    %4 = vector.load %arg3[%c0_4, %c0_5] : memref<1x256xf32, #tpu.memory_space<vmem>>, vector<1x256xf32>
    %5 = vector.broadcast %4 : vector<1x256xf32> to vector<32x256xf32>
    %6 = arith.addf %3, %5 : vector<32x256xf32>
    %7 = math.tanh %6 : vector<32x256xf32>
    %c0_6 = arith.constant 0 : index
    %c0_7 = arith.constant 0 : index
    %8 = vector.load %arg4[%c0_6, %c0_7] : memref<256x128xf32, #tpu.memory_space<vmem>>, vector<256x128xf32>
    %cst_8 = arith.constant dense<0.000000e+00> : vector<32x128xf32>
    %9 = tpu.matmul %7, %8, %cst_8 {dimension_numbers = #tpu.dot_dimension_numbers<[1], [0], [0], [1], [0, 0, 1, 1], [], []>} : vector<32x256xf32>, vector<256x128xf32>, vector<32x128xf32> -> vector<32x128xf32>
    %c0_9 = arith.constant 0 : index
    %c0_10 = arith.constant 0 : index
    %10 = vector.load %arg5[%c0_9, %c0_10] : memref<1x128xf32, #tpu.memory_space<vmem>>, vector<1x128xf32>
    %11 = vector.broadcast %10 : vector<1x128xf32> to vector<32x128xf32>
    %12 = arith.addf %9, %11 : vector<32x128xf32>
    %13 = vector.extract_strided_slice %12 {offsets = [0, 0], sizes = [16, 128], strides = [1, 1]} : vector<32x128xf32> to vector<16x128xf32>
    %c0_11 = arith.constant 0 : index
    %c0_12 = arith.constant 0 : index
    %14 = vector.load %arg6[%c0_11, %c0_12] : memref<16x256xf32, #tpu.memory_space<vmem>>, vector<16x128xf32>
    tpu.vector_store %arg6[%c0_11, %c0_12], %13 {strides = array<i32>} : memref<16x256xf32, #tpu.memory_space<vmem>>, vector<16x128xf32>,
    %15 = vector.extract_strided_slice %12 {offsets = [16, 0], sizes = [16, 128], strides = [1, 1]} : vector<32x128xf32> to vector<16x128xf32>
    %c0_13 = arith.constant 0 : index
    %c128 = arith.constant 128 : index
    %16 = vector.load %arg6[%c0_13, %c128] : memref<16x256xf32, #tpu.memory_space<vmem>>, vector<16x128xf32>
    tpu.vector_store %arg6[%c0_13, %c128], %15 {strides = array<i32>} : memref<16x256xf32, #tpu.memory_space<vmem>>, vector<16x128xf32>,
    return
  }
  func.func @transform_0(%arg0: i32) -> (i32, i32, i32) {
    %c0_i32 = arith.constant 0 : i32
    %c0_i32_0 = arith.constant 0 : i32
    %c0_i32_1 = arith.constant 0 : i32
    return %c0_i32, %arg0, %c0_i32_0 : i32, i32, i32
  }
  func.func @transform_1(%arg0: i32) -> (i32, i32) {
    %c0_i32 = arith.constant 0 : i32
    %c0_i32_0 = arith.constant 0 : i32
    %c0_i32_1 = arith.constant 0 : i32
    return %c0_i32, %c0_i32_0 : i32, i32
  }
  func.func @transform_2(%arg0: i32) -> (i32, i32) {
    %c0_i32 = arith.constant 0 : i32
    %c0_i32_0 = arith.constant 0 : i32
    %c0_i32_1 = arith.constant 0 : i32
    return %c0_i32, %c0_i32_0 : i32, i32
  }
  func.func @transform_3(%arg0: i32) -> (i32, i32) {
    %c0_i32 = arith.constant 0 : i32
    %c0_i32_0 = arith.constant 0 : i32
    %c0_i32_1 = arith.constant 0 : i32
    return %c0_i32, %c0_i32_0 : i32, i32
  }
  func.func @transform_4(%arg0: i32) -> (i32, i32) {
    %c0_i32 = arith.constant 0 : i32
    %c0_i32_0 = arith.constant 0 : i32
    %c0_i32_1 = arith.constant 0 : i32
    return %c0_i32, %c0_i32_0 : i32, i32
  }
  func.func @transform_5(%arg0: i32) -> (i32, i32) {
    %c0_i32 = arith.constant 0 : i32
    %c0_i32_0 = arith.constant 0 : i32
    return %arg0, %c0_i32 : i32, i32
  }
}

module attributes {stable_mosaic.version = 11 : i64} {
  func.func @kernel(%arg0: i32, %arg1: memref<2x16x64xf32, #tpu.memory_space<vmem>>, %arg2: memref<64x256xf32, #tpu.memory_space<vmem>>, %arg3: memref<1x256xf32, #tpu.memory_space<vmem>>, %arg4: memref<256x128xf32, #tpu.memory_space<vmem>>, %arg5: memref<1x128xf32, #tpu.memory_space<vmem>>, %arg6: memref<16x256xf32, #tpu.memory_space<vmem>>) attributes {dimension_semantics = [#tpu.dimension_semantics<parallel>], iteration_bounds = array<i64: 1>, scalar_prefetch = 0 : i64, scratch_operands = 0 : i64, tpu.core_type = #tpu.core_type<tc>, window_params = [{transform_indices = @transform_0, window_bounds = array<i64: 2, 16, 64>}, {pipeline_mode = #tpu.pipeline_mode<synchronous>, transform_indices = @transform_1, window_bounds = array<i64: 64, 256>}, {pipeline_mode = #tpu.pipeline_mode<synchronous>, transform_indices = @transform_2, window_bounds = array<i64: 1, 256>}, {pipeline_mode = #tpu.pipeline_mode<synchronous>, transform_indices = @transform_3, window_bounds = array<i64: 256, 128>}, {pipeline_mode = #tpu.pipeline_mode<synchronous>, transform_indices = @transform_4, window_bounds = array<i64: 1, 128>}, {transform_indices = @transform_5, window_bounds = array<i64: 16, 256>}]} {
    %c0 = arith.constant 0 : index
    %c0_0 = arith.constant 0 : index
    %c0_1 = arith.constant 0 : index
    %0 = vector.load %arg1[%c0, %c0_0, %c0_1] : memref<2x16x64xf32, #tpu.memory_space<vmem>>, vector<2x16x64xf32>
    %1 = vector.shape_cast %0 : vector<2x16x64xf32> to vector<32x64xf32>
    %c0_2 = arith.constant 0 : index
    %c0_3 = arith.constant 0 : index
    %2 = vector.load %arg2[%c0_2, %c0_3] : memref<64x256xf32, #tpu.memory_space<vmem>>, vector<64x256xf32>
    %cst = arith.constant dense<0.000000e+00> : vector<32x256xf32>
    %3 = tpu.matmul %1, %2, %cst {dimension_numbers = #tpu.dot_dimension_numbers<[1], [0], [0], [1], [0, 0, 1, 1], [], []>} : vector<32x64xf32>, vector<64x256xf32>, vector<32x256xf32> -> vector<32x256xf32>
    %c0_4 = arith.constant 0 : index
    %c0_5 = arith.constant 0 : index
    %4 = vector.load %arg3[%c0_4, %c0_5] : memref<1x256xf32, #tpu.memory_space<vmem>>, vector<1x256xf32>
    %5 = vector.broadcast %4 : vector<1x256xf32> to vector<32x256xf32>
    %6 = arith.addf %3, %5 : vector<32x256xf32>
    %7 = math.tanh %6 : vector<32x256xf32>
    %c0_6 = arith.constant 0 : index
    %c0_7 = arith.constant 0 : index
    %8 = vector.load %arg4[%c0_6, %c0_7] : memref<256x128xf32, #tpu.memory_space<vmem>>, vector<256x128xf32>
    %cst_8 = arith.constant dense<0.000000e+00> : vector<32x128xf32>
    %9 = tpu.matmul %7, %8, %cst_8 {dimension_numbers = #tpu.dot_dimension_numbers<[1], [0], [0], [1], [0, 0, 1, 1], [], []>} : vector<32x256xf32>, vector<256x128xf32>, vector<32x128xf32> -> vector<32x128xf32>
    %c0_9 = arith.constant 0 : index
    %c0_10 = arith.constant 0 : index
    %10 = vector.load %arg5[%c0_9, %c0_10] : memref<1x128xf32, #tpu.memory_space<vmem>>, vector<1x128xf32>
    %11 = vector.broadcast %10 : vector<1x128xf32> to vector<32x128xf32>
    %12 = arith.addf %9, %11 : vector<32x128xf32>
    %13 = vector.extract_strided_slice %12 {offsets = [0, 0], sizes = [16, 128], strides = [1, 1]} : vector<32x128xf32> to vector<16x128xf32>
    %c0_11 = arith.constant 0 : index
    %c0_12 = arith.constant 0 : index
    %14 = vector.load %arg6[%c0_11, %c0_12] : memref<16x256xf32, #tpu.memory_space<vmem>>, vector<16x128xf32>
    tpu.vector_store %arg6[%c0_11, %c0_12], %13 {strides = array<i32>} : memref<16x256xf32, #tpu.memory_space<vmem>>, vector<16x128xf32>,
    %15 = vector.extract_strided_slice %12 {offsets = [16, 0], sizes = [16, 128], strides = [1, 1]} : vector<32x128xf32> to vector<16x128xf32>
    %c0_13 = arith.constant 0 : index
    %c128 = arith.constant 128 : index
    %16 = vector.load %arg6[%c0_13, %c128] : memref<16x256xf32, #tpu.memory_space<vmem>>, vector<16x128xf32>
    tpu.vector_store %arg6[%c0_13, %c128], %15 {strides = array<i32>} : memref<16x256xf32, #tpu.memory_space<vmem>>, vector<16x128xf32>,
    return
  }
  func.func @transform_0(%arg0: i32) -> (i32, i32, i32) {
    %c0_i32 = arith.constant 0 : i32
    %c0_i32_0 = arith.constant 0 : i32
    %c0_i32_1 = arith.constant 0 : i32
    return %c0_i32, %arg0, %c0_i32_0 : i32, i32, i32
  }
  func.func @transform_1(%arg0: i32) -> (i32, i32) {
    %c0_i32 = arith.constant 0 : i32
    %c0_i32_0 = arith.constant 0 : i32
    %c0_i32_1 = arith.constant 0 : i32
    return %c0_i32, %c0_i32_0 : i32, i32
  }
  func.func @transform_2(%arg0: i32) -> (i32, i32) {
    %c0_i32 = arith.constant 0 : i32
    %c0_i32_0 = arith.constant 0 : i32
    %c0_i32_1 = arith.constant 0 : i32
    return %c0_i32, %c0_i32_0 : i32, i32
  }
  func.func @transform_3(%arg0: i32) -> (i32, i32) {
    %c0_i32 = arith.constant 0 : i32
    %c0_i32_0 = arith.constant 0 : i32
    %c0_i32_1 = arith.constant 0 : i32
    return %c0_i32, %c0_i32_0 : i32, i32
  }
  func.func @transform_4(%arg0: i32) -> (i32, i32) {
    %c0_i32 = arith.constant 0 : i32
    %c0_i32_0 = arith.constant 0 : i32
    %c0_i32_1 = arith.constant 0 : i32
    return %c0_i32, %c0_i32_0 : i32, i32
  }
  func.func @transform_5(%arg0: i32) -> (i32, i32) {
    %c0_i32 = arith.constant 0 : i32
    %c0_i32_0 = arith.constant 0 : i32
    return %arg0, %c0_i32 : i32, i32
  }
}

</mosaic_0001>

<bundles_post_ra>
// kernel: tpu_custom_call.1
= control target key start
LH: loop header
LB: loop body
LE: loop exit
PB: predicated region body
PF: predicated region fallthrough
CT: control target
= control target key end

     0   :  { %10 = vsyncpa [#allocation3], 0  ;;  %s571_s0 = inlined_call_operand.hbm [shape: f32[2,16,64], index: 0, kind: input, shape index: {}]   ;;  %s572_s1 = inlined_call_operand.hbm [shape: f32[64,256], index: 1, kind: input, shape index: {}]   ;;  %s573_s2 = inlined_call_operand.hbm [shape: f32[1,256], index: 2, kind: input, shape index: {}]   ;;  %s574_s3 = inlined_call_operand.hbm [shape: f32[256,128], index: 3, kind: input, shape index: {}]   ;;  %s575_s4 = inlined_call_operand.vmem [shape: f32[1,128], index: 4, kind: input, shape index: {}]   ;;  %s576_s5 = inlined_call_operand.hbm [shape: f32[16,256], index: 5, kind: output, shape index: {}]  }
   0x1   :  { %11 = vsyncpa [#allocation6], 0 }
   0x2   :  { %12 = vsyncpa [#allocation9], 0  ;;  %s31_s20 = sshll.u32 %s572_s1, 4  ;;  %s32_s20 = int_to_ptr.hbm [resolvable:$true] %s31_s20 }
   0x3   :  { %13 = vsyncpa [#allocation4], 0  ;;  %s500_s21 = smov [#allocation5]   ;;  %s18_s25 = sshll.u32 %s571_s0, 4  ;;  %s19_s25 = int_to_ptr.hbm [resolvable:$true] %s18_s25 }
   0x4   :  { %s33_s22 = sshll.u32 %s500_s21, 4  ;;  %s501_s26 = smov 256   ;;  %s34_s22 = int_to_ptr.vmem [resolvable:$true] %s33_s22 }
   0x5   :  { %s502_s27 = smov 16   ;;  %s503_s28 = smov [#allocation2]  }
   0x6   :  { %39 = dma.hbm_to_vmem [thread:$0]  %s32_s20, 2048, %s34_s22, [#allocation6], %s501_s26, %s501_s26, %s502_s27  }
   0x7   :  { %s20_s29 = sshll.u32 %s503_s28, 4  ;;  %s504_s1 = smov 128   ;;  %s21_s29 = int_to_ptr.vmem [resolvable:$true] %s20_s29 }
   0x8   :  { %s505_s30 = smov 8   ;;  %s45_s8 = sshll.u32 %s573_s2, 4  ;;  %s46_s8 = int_to_ptr.hbm [resolvable:$true] %s45_s8 }
   0x9   :  { %26 = dma.hbm_to_vmem [thread:$0]  %s19_s25, 512, %s21_s29, [#allocation3], %s504_s1, %s504_s1, %s505_s30  }
   0xa   :  { %s506_s9 = smov [#allocation7]   ;;  %s55_s12 = sshll.u32 %s574_s3, 4  ;;  %s56_s12 = int_to_ptr.hbm [resolvable:$true] %s55_s12 }
   0xb   :  { %s47_s0 = sshll.u32 %s506_s9, 4  ;;  %s507_s13 = smov [#allocation8]   ;;  %s48_s0 = int_to_ptr.vmem [resolvable:$true] %s47_s0 }
   0xc   :  { %50 = dma.hbm_to_vmem [thread:$0]  %s46_s8, 32, %s48_s0, [#allocation6]  }
   0xd   :  { %s57_s14 = sshll.u32 %s507_s13, 4  ;;  %s58_s14 = int_to_ptr.vmem [resolvable:$true] %s57_s14 }
   0xe   :  { %63 = dma.hbm_to_vmem [thread:$0]  %s56_s12, 4096, %s58_s14, [#allocation9], %s504_s1, %s504_s1, %s505_s30  }
   0xf   :  { %492 = dma.done.wait [#allocation3], 512  }
  0x10   :  { %493 = vsyncadd [#allocation3], 4294966784 }
  0x11   :  { %494 = dma.done.wait [#allocation6], 2080  }
  0x12   :  { %495 = vsyncadd [#allocation6], 4294965216 }
  0x13   :  { %496 = dma.done.wait [#allocation9], 4096  }
  0x14   :  { %497 = vsyncadd [#allocation9], 4294963200  ;;  %v100_v0 = vld [vmem:[#allocation5 + $0x70] sm:$0xff]  ;;  %v98_v1 = vld [vmem:[#allocation5 + $0x60] sm:$0xff]  ;;  %vm108_vm0 = vcmask 523264   ;;  %s508_s15 = smov [#allocation10]  }
  0x15   :  { %v101_v2 = vld [vmem:[#allocation5 + $0x78] sm:$0xff]  ;;  %129 = vmatpush.msra.mxu0 %v100_v0  ;;  %v99_v3 = vld [vmem:[#allocation5 + $0x68] sm:$0xff]  ;;  %v96_v4 = vld [vmem:[#allocation5 + $0x50] sm:$0xff]  ;;  %s289_s16 = sshll.u32 %s508_s15, 4  ;;  %s291_s18 = sshll.u32 %s576_s5, 4  ;;  %s290_s16 = int_to_ptr.vmem [resolvable:$true] %s289_s16  ;;  %s292_s18 = int_to_ptr.hbm [resolvable:$true] %s291_s18 }
  0x16   :  { %158 = vmatpush.msra.mxu1 %v101_v2  ;;  %v97_v5 = vld [vmem:[#allocation5 + $0x58] sm:$0xff]  ;;  %v94_v6 = vld [vmem:[#allocation5 + $0x40] sm:$0xff]  ;;  %v95_v7 = vld [vmem:[#allocation5 + $0x48] sm:$0xff] }
  0x17   :  { %130 = vmatpush.msra.mxu0 %v98_v1  ;;  %v92_v8 = vld [vmem:[#allocation5 + $0x30] sm:$0xff]  ;;  %v93_v9 = vld [vmem:[#allocation5 + $0x38] sm:$0xff]  ;;  %v90_v10 = vld [vmem:[#allocation5 + $0x20] sm:$0xff] }
  0x18   :  { %159 = vmatpush.msra.mxu1 %v99_v3  ;;  %v91_v11 = vld [vmem:[#allocation5 + $0x28] sm:$0xff]  ;;  %v202_v12 = vld [vmem:[#allocation8 + $0x78] sm:$0xff]  ;;  %v88_v14 = vld [vmem:[#allocation5 + $0x10] sm:$0xff] }
  0x19   :  { %131 = vmatpush.msra.mxu0 %v96_v4  ;;  %v218_v13 = vld [vmem:[#allocation8 + $0xf8] sm:$0xff]  ;;  %314 = vmatpush.msra.mxu2 %v202_v12  ;;  %v201_v16 = vld [vmem:[#allocation8 + $0x70] sm:$0xff]  ;;  %v87_v19 = vld [vmem:[#allocation5 + $0x8] sm:$0xff] }
  0x1a   :  { %160 = vmatpush.msra.mxu1 %v97_v5  ;;  %v89_v15 = vld [vmem:[#allocation5 + $0x18] sm:$0xff]  ;;  %330 = vmatpush.msra.mxu3 %v218_v13  ;;  %v86_v18 = vld [vmem:[#allocation5] sm:$0xff]  ;;  %v200_v21 = vld [vmem:[#allocation8 + $0x68] sm:$0xff] }
  0x1b   :  { %132 = vmatpush.msra.mxu0 %v94_v6  ;;  %v217_v17 = vld [vmem:[#allocation8 + $0xf0] sm:$0xff]  ;;  %315 = vmatpush.msra.mxu2 %v201_v16  ;;  %v82_v20 = vld [vmem:[#allocation2] sm:$0xff]  ;;  %v216_v22 = vld [vmem:[#allocation8 + $0xe8] sm:$0xff] }
  0x1c   :  { %161 = vmatpush.msra.mxu1 %v95_v7  ;;  %331 = vmatpush.msra.mxu3 %v217_v17  ;;  %v199_v23 = vld [vmem:[#allocation8 + $0x60] sm:$0xff]  ;;  %v198_v25 = vld [vmem:[#allocation8 + $0x58] sm:$0xff]  ;;  %v197_v28 = vld [vmem:[#allocation8 + $0x50] sm:$0xff] }
  0x1d   :  { %133 = vmatpush.msra.mxu0 %v92_v8  ;;  %316 = vmatpush.msra.mxu2 %v200_v21  ;;  %v215_v24 = vld [vmem:[#allocation8 + $0xe0] sm:$0xff]  ;;  %v214_v26 = vld [vmem:[#allocation8 + $0xd8] sm:$0xff]  ;;  %v213_v29 = vld [vmem:[#allocation8 + $0xd0] sm:$0xff] }
  0x1e   :  { %162 = vmatpush.msra.mxu1 %v93_v9  ;;  %332 = vmatpush.msra.mxu3 %v216_v22  ;;  %v83_v27 = vld [vmem:[#allocation2 + $0x8] sm:$0xff]  ;;  %v84_v34 = vld [vmem:[#allocation2 + $0x10] sm:$0xff]  ;;  %v194_v35 = vld [vmem:[#allocation8 + $0x38] sm:$0xff] }
  0x1f   :  { %134 = vmatpush.msra.mxu0 %v90_v10  ;;  %317 = vmatpush.msra.mxu2 %v199_v23  ;;  %v196_v30 = vld [vmem:[#allocation8 + $0x48] sm:$0xff]  ;;  %v195_v32 = vld [vmem:[#allocation8 + $0x40] sm:$0xff]  ;;  %v210_v36 = vld [vmem:[#allocation8 + $0xb8] sm:$0xff] }
  0x20   :  { %163 = vmatpush.msra.mxu1 %v91_v11  ;;  %333 = vmatpush.msra.mxu3 %v215_v24  ;;  %v212_v31 = vld [vmem:[#allocation8 + $0xc8] sm:$0xff]  ;;  %v211_v33 = vld [vmem:[#allocation8 + $0xc0] sm:$0xff]  ;;  %v193_v37 = vld [vmem:[#allocation8 + $0x30] sm:$0xff] }
  0x21   :  { %135 = vmatpush.msra.mxu0 %v88_v14  ;;  %318 = vmatpush.msra.mxu2 %v198_v25  ;;  %v209_v38 = vld [vmem:[#allocation8 + $0xb0] sm:$0xff]  ;;  %v192_v39 = vld [vmem:[#allocation8 + $0x28] sm:$0xff]  ;;  %v191_v41 = vld [vmem:[#allocation8 + $0x20] sm:$0xff] }
  0x22   :  { %164 = vmatpush.msra.mxu1 %v89_v15  ;;  %334 = vmatpush.msra.mxu3 %v214_v26  ;;  %v85_v40 = vld [vmem:[#allocation2 + $0x18] sm:$0xff]  ;;  %v208_v42 = vld [vmem:[#allocation8 + $0xa8] sm:$0xff]  ;;  %v207_v44 = vld [vmem:[#allocation8 + $0xa0] sm:$0xff] }
  0x23   :  { %136 = vmatpush.msra.mxu0 %v86_v18  ;;  %319 = vmatpush.msra.mxu2 %v197_v28  ;;  %v190_v43 = vld [vmem:[#allocation8 + $0x18] sm:$0xff]  ;;  %v189_v45 = vld [vmem:[#allocation8 + $0x10] sm:$0xff]  ;;  %v188_v47 = vld [vmem:[#allocation8 + $0x8] sm:$0xff] }
  0x24   :  { %165 = vmatpush.msra.mxu1 %v87_v19  ;;  %306 = vmatmul.msk.f32.vlgmr.msra.gmra.mxu0 %vm108_vm0, %v82_v20  ;;  %v206_v46 = vld [vmem:[#allocation8 + $0x98] sm:$0xff]  ;;  %v205_v48 = vld [vmem:[#allocation8 + $0x90] sm:$0xff]  ;;  %v187_v49 = vld [vmem:[#allocation8] sm:$0xff] }
  0x25   :  { %310 = vmatmul.msk.f32.vlgmr.msra.gmra.mxu1 %vm108_vm0, %v82_v20  ;;  %223 = vmatpush.msrb.mxu0 %v202_v12  ;;  %v204_v50 = vld [vmem:[#allocation8 + $0x88] sm:$0xff]  ;;  %v203_v51 = vld [vmem:[#allocation8 + $0x80] sm:$0xff]  ;;  %v102_v52 = vld [vmem:[#allocation7] sm:$0x3] }
  0x26   :  { %252 = vmatpush.msrb.mxu1 %v218_v13  ;;  %335 = vmatpush.msra.mxu3 %v213_v29  ;;  %v104_v53 = vperm.slane %v102_v52, 0  ;;  %v105_v54 = vperm.slane %v102_v52, 1  ;;  %v355_v15 = vld [vmem:[%s575_s4] ss:$0 sm:$0xff] }
  0x27   :  { %224 = vmatpush.msrb.mxu0 %v201_v16  ;;  %320 = vmatpush.msra.mxu2 %v196_v30 }
  0x28   :  { %253 = vmatpush.msrb.mxu1 %v217_v17  ;;  %336 = vmatpush.msra.mxu3 %v212_v31 }
  0x29   :  { %225 = vmatpush.msrb.mxu0 %v200_v21  ;;  %321 = vmatpush.msra.mxu2 %v195_v32 }
  0x2a   :  { %254 = vmatpush.msrb.mxu1 %v216_v22  ;;  %337 = vmatpush.msra.mxu3 %v211_v33 }
  0x2b   :  { %226 = vmatpush.msrb.mxu0 %v199_v23  ;;  %322 = vmatpush.msra.mxu2 %v194_v35 }
  0x2c   :  { %255 = vmatpush.msrb.mxu1 %v215_v24  ;;  %307 = vmatmul.msk.f32.gmra.mxu0 %vm108_vm0, %v83_v27 }
  0x2d   :  { %311 = vmatmul.msk.f32.gmra.mxu1 %vm108_vm0, %v83_v27  ;;  %227 = vmatpush.msrb.mxu0 %v198_v25 }
  0x2e   :  { %256 = vmatpush.msrb.mxu1 %v214_v26  ;;  %338 = vmatpush.msra.mxu3 %v210_v36 }
  0x2f   :  { %228 = vmatpush.msrb.mxu0 %v197_v28  ;;  %323 = vmatpush.msra.mxu2 %v193_v37 }
  0x30   :  { %257 = vmatpush.msrb.mxu1 %v213_v29  ;;  %339 = vmatpush.msra.mxu3 %v209_v38 }
  0x31   :  { %229 = vmatpush.msrb.mxu0 %v196_v30  ;;  %324 = vmatpush.msra.mxu2 %v192_v39 }
  0x32   :  { %258 = vmatpush.msrb.mxu1 %v212_v31  ;;  %340 = vmatpush.msra.mxu3 %v208_v42 }
  0x33   :  { %230 = vmatpush.msrb.mxu0 %v195_v32  ;;  %325 = vmatpush.msra.mxu2 %v191_v41 }
  0x34   :  { %259 = vmatpush.msrb.mxu1 %v211_v33  ;;  %308 = vmatmul.msk.f32.gmra.mxu0 %vm108_vm0, %v84_v34 }
  0x35   :  { %312 = vmatmul.msk.f32.gmra.mxu1 %vm108_vm0, %v84_v34  ;;  %231 = vmatpush.msrb.mxu0 %v194_v35 }
  0x36   :  { %260 = vmatpush.msrb.mxu1 %v210_v36  ;;  %326 = vmatpush.msra.mxu2 %v190_v43 }
  0x37   :  { %232 = vmatpush.msrb.mxu0 %v193_v37  ;;  %341 = vmatpush.msra.mxu3 %v207_v44 }
  0x38   :  { %261 = vmatpush.msrb.mxu1 %v209_v38  ;;  %327 = vmatpush.msra.mxu2 %v189_v45 }
  0x39   :  { %233 = vmatpush.msrb.mxu0 %v192_v39  ;;  %342 = vmatpush.msra.mxu3 %v206_v46 }
  0x3a   :  { %262 = vmatpush.msrb.mxu1 %v208_v42  ;;  %328 = vmatpush.msra.mxu2 %v188_v47 }
  0x3b   :  { %234 = vmatpush.msrb.mxu0 %v191_v41  ;;  %343 = vmatpush.msra.mxu3 %v205_v48 }
  0x3c   :  { %309 = vmatmul.msk.f32.gmra.mxu0 %vm108_vm0, %v85_v40  ;;  %263 = vmatpush.msrb.mxu1 %v207_v44 }
  0x3d   :  { %313 = vmatmul.msk.f32.gmra.mxu1 %vm108_vm0, %v85_v40  ;;  %235 = vmatpush.msrb.mxu0 %v190_v43 }
  0x3e   :  { %264 = vmatpush.msrb.mxu1 %v206_v46  ;;  %329 = vmatpush.msra.mxu2 %v187_v49 }
  0x3f   :  { %236 = vmatpush.msrb.mxu0 %v189_v45  ;;  %344 = vmatpush.msra.mxu3 %v204_v50 }
  0x40   :  { %265 = vmatpush.msrb.mxu1 %v205_v48 }
  0x41   :  { %237 = vmatpush.msrb.mxu0 %v188_v47  ;;  %345 = vmatpush.msra.mxu3 %v203_v51 }
  0x42   :  { %266 = vmatpush.msrb.mxu1 %v204_v50 }
  0x43   :  { %238 = vmatpush.msrb.mxu0 %v187_v49 }
  0x44   :  { %267 = vmatpush.msrb.mxu1 %v203_v51 }
  0xa1   :  { %v138_v55 = vpop.f32.mrf.mxu0 }
  0xa2   :  { %v167_v56 = vpop.f32.mrf.mxu1  ;;  %v139_v57 = vadd.f32 %v138_v55, %v104_v53 }
  0xa3   :  { %v168_v58 = vadd.f32 %v167_v56, %v105_v54 }
  0xa4   :  { %356 = vtanh.f32 %v139_v57 }
  0xa5   :  { %358 = vtanh.f32 %v168_v58 }
  0xa9   :  { %v141_v59 = vpop.f32.mrf.mxu0 }
  0xaa   :  { %v170_v60 = vpop.f32.mrf.mxu1  ;;  %v357_v61 = vpop.eup %356  ;;  %v142_v62 = vadd.f32 %v141_v59, %v104_v53 }
  0xab   :  { %v171_v63 = vadd.f32 %v170_v60, %v105_v54  ;;  %v359_v0 = vpop.eup %358  ;;  %239 = vmatmul.f32.vlgmr.msrb.gmra.mxu0 %v357_v61 }
  0xac   :  { %360 = vtanh.f32 %v142_v62  ;;  %268 = vmatmul.f32.vlgmr.msrb.gmra.mxu1 %v359_v0 }
  0xad   :  { %362 = vtanh.f32 %v171_v63 }
  0xb1   :  { %v144_v1 = vpop.f32.mrf.mxu0 }
  0xb2   :  { %v173_v2 = vpop.f32.mrf.mxu1  ;;  %v361_v3 = vpop.eup %360  ;;  %v145_v4 = vadd.f32 %v144_v1, %v104_v53 }
  0xb3   :  { %v174_v5 = vadd.f32 %v173_v2, %v105_v54  ;;  %v363_v6 = vpop.eup %362  ;;  %242 = vmatmul.f32.vlgmr.msra.gmra.mxu2 %v361_v3 }
  0xb4   :  { %364 = vtanh.f32 %v145_v4  ;;  %271 = vmatmul.f32.vlgmr.msra.gmra.mxu3 %v363_v6 }
  0xb5   :  { %366 = vtanh.f32 %v174_v5 }
  0xb9   :  { %v147_v7 = vpop.f32.mrf.mxu0 }
  0xba   :  { %v176_v8 = vpop.f32.mrf.mxu1  ;;  %v365_v9 = vpop.eup %364  ;;  %v148_v10 = vadd.f32 %v147_v7, %v104_v53 }
  0xbb   :  { %v177_v11 = vadd.f32 %v176_v8, %v105_v54  ;;  %v367_v12 = vpop.eup %366  ;;  %245 = vmatmul.f32.gmra.mxu2 %v365_v9 }
  0xbc   :  { %368 = vtanh.f32 %v148_v10  ;;  %274 = vmatmul.f32.gmra.mxu3 %v367_v12 }
  0xbd   :  { %370 = vtanh.f32 %v177_v11 }
  0xc2   :  { %v369_v13 = vpop.eup %368 }
  0xc3   :  { %v371_v14 = vpop.eup %370  ;;  %248 = vmatmul.f32.gmra.mxu2 %v369_v13 }
  0xc4   :  { %277 = vmatmul.f32.gmra.mxu3 %v371_v14 }
 0x128   :  { %v240_v16 = vpop.f32.mrf.mxu0 }
 0x129   :  { %v241_v17 = vadd.f32 %v355_v15, %v240_v16  ;;  %v269_v18 = vpop.f32.mrf.mxu1 }
 0x12b   :  { %v270_v19 = vadd.f32 %v269_v18, %v241_v17 }
 0x12d   :  { %281 = vst [vmem:[#allocation10] sm:$0xff] %v270_v19 }
 0x136   :  { %v243_v20 = vpop.f32.mrf.mxu2 }
 0x137   :  { %v244_v21 = vadd.f32 %v355_v15, %v243_v20  ;;  %v272_v22 = vpop.f32.mrf.mxu3 }
 0x139   :  { %v273_v23 = vadd.f32 %v272_v22, %v244_v21 }
 0x13b   :  { %282 = vst [vmem:[#allocation10 + $0x10] sm:$0xff] %v273_v23 }
 0x13e   :  { %v246_v24 = vpop.f32.mrf.mxu2 }
 0x13f   :  { %v247_v25 = vadd.f32 %v355_v15, %v246_v24  ;;  %v275_v26 = vpop.f32.mrf.mxu3 }
 0x141   :  { %v276_v27 = vadd.f32 %v275_v26, %v247_v25 }
 0x143   :  { %283 = vst [vmem:[#allocation10 + $0x8] sm:$0xff] %v276_v27 }
 0x146   :  { %v249_v28 = vpop.f32.mrf.mxu2 }
 0x147   :  { %v250_v29 = vadd.f32 %v355_v15, %v249_v28  ;;  %v278_v30 = vpop.f32.mrf.mxu3 }
 0x149   :  { %v279_v31 = vadd.f32 %v278_v30, %v250_v29 }
 0x14b   :  { %284 = vst [vmem:[#allocation10 + $0x18] sm:$0xff] %v279_v31 }
 0x14c   :  { %297 = dma.vmem_to_hbm [thread:$0]  %s290_s16, 512, %s292_s18, [#allocation4], %s501_s26, %s501_s26, %s502_s27  }
 0x14d   :  { %498 = dma.done.wait [#allocation4], 512  }
 0x14e   :  { %499 = vsyncadd [#allocation4], 4294966784 }
 0x14f   :  { %302 = vsyncpa [#allocation3], 1 }
 0x150   :  { %303 = vsyncpa [#allocation6], 1 }
 0x151   :  { %304 = vsyncpa [#allocation9], 1 }
 0x152   :  { %305 = vsyncpa [#allocation4], 1 }

// kernel: tpu_custom_call.1
= control target key start
LH: loop header
LB: loop body
LE: loop exit
PB: predicated region body
PF: predicated region fallthrough
CT: control target
= control target key end

     0   :  { %10 = vsyncpa [#allocation3], 0  ;;  %s571_s0 = inlined_call_operand.hbm [shape: f32[2,16,64], index: 0, kind: input, shape index: {}]   ;;  %s572_s1 = inlined_call_operand.hbm [shape: f32[64,256], index: 1, kind: input, shape index: {}]   ;;  %s573_s2 = inlined_call_operand.hbm [shape: f32[1,256], index: 2, kind: input, shape index: {}]   ;;  %s574_s3 = inlined_call_operand.hbm [shape: f32[256,128], index: 3, kind: input, shape index: {}]   ;;  %s575_s4 = inlined_call_operand.vmem [shape: f32[1,128], index: 4, kind: input, shape index: {}]   ;;  %s576_s5 = inlined_call_operand.hbm [shape: f32[16,256], index: 5, kind: output, shape index: {}]  }
   0x1   :  { %11 = vsyncpa [#allocation6], 0 }
   0x2   :  { %12 = vsyncpa [#allocation9], 0  ;;  %s31_s20 = sshll.u32 %s572_s1, 4  ;;  %s32_s20 = int_to_ptr.hbm [resolvable:$true] %s31_s20 }
   0x3   :  { %13 = vsyncpa [#allocation4], 0  ;;  %s500_s21 = smov [#allocation5]   ;;  %s18_s25 = sshll.u32 %s571_s0, 4  ;;  %s19_s25 = int_to_ptr.hbm [resolvable:$true] %s18_s25 }
   0x4   :  { %s33_s22 = sshll.u32 %s500_s21, 4  ;;  %s501_s26 = smov 256   ;;  %s34_s22 = int_to_ptr.vmem [resolvable:$true] %s33_s22 }
   0x5   :  { %s502_s27 = smov 16   ;;  %s503_s28 = smov [#allocation2]  }
   0x6   :  { %39 = dma.hbm_to_vmem [thread:$0]  %s32_s20, 2048, %s34_s22, [#allocation6], %s501_s26, %s501_s26, %s502_s27  }
   0x7   :  { %s20_s29 = sshll.u32 %s503_s28, 4  ;;  %s504_s1 = smov 128   ;;  %s21_s29 = int_to_ptr.vmem [resolvable:$true] %s20_s29 }
   0x8   :  { %s505_s30 = smov 8   ;;  %s45_s8 = sshll.u32 %s573_s2, 4  ;;  %s46_s8 = int_to_ptr.hbm [resolvable:$true] %s45_s8 }
   0x9   :  { %26 = dma.hbm_to_vmem [thread:$0]  %s19_s25, 512, %s21_s29, [#allocation3], %s504_s1, %s504_s1, %s505_s30  }
   0xa   :  { %s506_s9 = smov [#allocation7]   ;;  %s55_s12 = sshll.u32 %s574_s3, 4  ;;  %s56_s12 = int_to_ptr.hbm [resolvable:$true] %s55_s12 }
   0xb   :  { %s47_s0 = sshll.u32 %s506_s9, 4  ;;  %s507_s13 = smov [#allocation8]   ;;  %s48_s0 = int_to_ptr.vmem [resolvable:$true] %s47_s0 }
   0xc   :  { %50 = dma.hbm_to_vmem [thread:$0]  %s46_s8, 32, %s48_s0, [#allocation6]  }
   0xd   :  { %s57_s14 = sshll.u32 %s507_s13, 4  ;;  %s58_s14 = int_to_ptr.vmem [resolvable:$true] %s57_s14 }
   0xe   :  { %63 = dma.hbm_to_vmem [thread:$0]  %s56_s12, 4096, %s58_s14, [#allocation9], %s504_s1, %s504_s1, %s505_s30  }
   0xf   :  { %492 = dma.done.wait [#allocation3], 512  }
  0x10   :  { %493 = vsyncadd [#allocation3], 4294966784 }
  0x11   :  { %494 = dma.done.wait [#allocation6], 2080  }
  0x12   :  { %495 = vsyncadd [#allocation6], 4294965216 }
  0x13   :  { %496 = dma.done.wait [#allocation9], 4096  }
  0x14   :  { %497 = vsyncadd [#allocation9], 4294963200  ;;  %v100_v0 = vld [vmem:[#allocation5 + $0x70] sm:$0xff]  ;;  %v98_v1 = vld [vmem:[#allocation5 + $0x60] sm:$0xff]  ;;  %vm108_vm0 = vcmask 523264   ;;  %s508_s15 = smov [#allocation10]  }
  0x15   :  { %v101_v2 = vld [vmem:[#allocation5 + $0x78] sm:$0xff]  ;;  %129 = vmatpush.msra.mxu0 %v100_v0  ;;  %v99_v3 = vld [vmem:[#allocation5 + $0x68] sm:$0xff]  ;;  %v96_v4 = vld [vmem:[#allocation5 + $0x50] sm:$0xff]  ;;  %s289_s16 = sshll.u32 %s508_s15, 4  ;;  %s291_s18 = sshll.u32 %s576_s5, 4  ;;  %s290_s16 = int_to_ptr.vmem [resolvable:$true] %s289_s16  ;;  %s292_s18 = int_to_ptr.hbm [resolvable:$true] %s291_s18 }
  0x16   :  { %158 = vmatpush.msra.mxu1 %v101_v2  ;;  %v97_v5 = vld [vmem:[#allocation5 + $0x58] sm:$0xff]  ;;  %v94_v6 = vld [vmem:[#allocation5 + $0x40] sm:$0xff]  ;;  %v95_v7 = vld [vmem:[#allocation5 + $0x48] sm:$0xff] }
  0x17   :  { %130 = vmatpush.msra.mxu0 %v98_v1  ;;  %v92_v8 = vld [vmem:[#allocation5 + $0x30] sm:$0xff]  ;;  %v93_v9 = vld [vmem:[#allocation5 + $0x38] sm:$0xff]  ;;  %v90_v10 = vld [vmem:[#allocation5 + $0x20] sm:$0xff] }
  0x18   :  { %159 = vmatpush.msra.mxu1 %v99_v3  ;;  %v91_v11 = vld [vmem:[#allocation5 + $0x28] sm:$0xff]  ;;  %v202_v12 = vld [vmem:[#allocation8 + $0x78] sm:$0xff]  ;;  %v88_v14 = vld [vmem:[#allocation5 + $0x10] sm:$0xff] }
  0x19   :  { %131 = vmatpush.msra.mxu0 %v96_v4  ;;  %v218_v13 = vld [vmem:[#allocation8 + $0xf8] sm:$0xff]  ;;  %314 = vmatpush.msra.mxu2 %v202_v12  ;;  %v201_v16 = vld [vmem:[#allocation8 + $0x70] sm:$0xff]  ;;  %v87_v19 = vld [vmem:[#allocation5 + $0x8] sm:$0xff] }
  0x1a   :  { %160 = vmatpush.msra.mxu1 %v97_v5  ;;  %v89_v15 = vld [vmem:[#allocation5 + $0x18] sm:$0xff]  ;;  %330 = vmatpush.msra.mxu3 %v218_v13  ;;  %v86_v18 = vld [vmem:[#allocation5] sm:$0xff]  ;;  %v200_v21 = vld [vmem:[#allocation8 + $0x68] sm:$0xff] }
  0x1b   :  { %132 = vmatpush.msra.mxu0 %v94_v6  ;;  %v217_v17 = vld [vmem:[#allocation8 + $0xf0] sm:$0xff]  ;;  %315 = vmatpush.msra.mxu2 %v201_v16  ;;  %v82_v20 = vld [vmem:[#allocation2] sm:$0xff]  ;;  %v216_v22 = vld [vmem:[#allocation8 + $0xe8] sm:$0xff] }
  0x1c   :  { %161 = vmatpush.msra.mxu1 %v95_v7  ;;  %331 = vmatpush.msra.mxu3 %v217_v17  ;;  %v199_v23 = vld [vmem:[#allocation8 + $0x60] sm:$0xff]  ;;  %v198_v25 = vld [vmem:[#allocation8 + $0x58] sm:$0xff]  ;;  %v197_v28 = vld [vmem:[#allocation8 + $0x50] sm:$0xff] }
  0x1d   :  { %133 = vmatpush.msra.mxu0 %v92_v8  ;;  %316 = vmatpush.msra.mxu2 %v200_v21  ;;  %v215_v24 = vld [vmem:[#allocation8 + $0xe0] sm:$0xff]  ;;  %v214_v26 = vld [vmem:[#allocation8 + $0xd8] sm:$0xff]  ;;  %v213_v29 = vld [vmem:[#allocation8 + $0xd0] sm:$0xff] }
  0x1e   :  { %162 = vmatpush.msra.mxu1 %v93_v9  ;;  %332 = vmatpush.msra.mxu3 %v216_v22  ;;  %v83_v27 = vld [vmem:[#allocation2 + $0x8] sm:$0xff]  ;;  %v84_v34 = vld [vmem:[#allocation2 + $0x10] sm:$0xff]  ;;  %v194_v35 = vld [vmem:[#allocation8 + $0x38] sm:$0xff] }
  0x1f   :  { %134 = vmatpush.msra.mxu0 %v90_v10  ;;  %317 = vmatpush.msra.mxu2 %v199_v23  ;;  %v196_v30 = vld [vmem:[#allocation8 + $0x48] sm:$0xff]  ;;  %v195_v32 = vld [vmem:[#allocation8 + $0x40] sm:$0xff]  ;;  %v210_v36 = vld [vmem:[#allocation8 + $0xb8] sm:$0xff] }
  0x20   :  { %163 = vmatpush.msra.mxu1 %v91_v11  ;;  %333 = vmatpush.msra.mxu3 %v215_v24  ;;  %v212_v31 = vld [vmem:[#allocation8 + $0xc8] sm:$0xff]  ;;  %v211_v33 = vld [vmem:[#allocation8 + $0xc0] sm:$0xff]  ;;  %v193_v37 = vld [vmem:[#allocation8 + $0x30] sm:$0xff] }
  0x21   :  { %135 = vmatpush.msra.mxu0 %v88_v14  ;;  %318 = vmatpush.msra.mxu2 %v198_v25  ;;  %v209_v38 = vld [vmem:[#allocation8 + $0xb0] sm:$0xff]  ;;  %v192_v39 = vld [vmem:[#allocation8 + $0x28] sm:$0xff]  ;;  %v191_v41 = vld [vmem:[#allocation8 + $0x20] sm:$0xff] }
  0x22   :  { %164 = vmatpush.msra.mxu1 %v89_v15  ;;  %334 = vmatpush.msra.mxu3 %v214_v26  ;;  %v85_v40 = vld [vmem:[#allocation2 + $0x18] sm:$0xff]  ;;  %v208_v42 = vld [vmem:[#allocation8 + $0xa8] sm:$0xff]  ;;  %v207_v44 = vld [vmem:[#allocation8 + $0xa0] sm:$0xff] }
  0x23   :  { %136 = vmatpush.msra.mxu0 %v86_v18  ;;  %319 = vmatpush.msra.mxu2 %v197_v28  ;;  %v190_v43 = vld [vmem:[#allocation8 + $0x18] sm:$0xff]  ;;  %v189_v45 = vld [vmem:[#allocation8 + $0x10] sm:$0xff]  ;;  %v188_v47 = vld [vmem:[#allocation8 + $0x8] sm:$0xff] }
  0x24   :  { %165 = vmatpush.msra.mxu1 %v87_v19  ;;  %306 = vmatmul.msk.f32.vlgmr.msra.gmra.mxu0 %vm108_vm0, %v82_v20  ;;  %v206_v46 = vld [vmem:[#allocation8 + $0x98] sm:$0xff]  ;;  %v205_v48 = vld [vmem:[#allocation8 + $0x90] sm:$0xff]  ;;  %v187_v49 = vld [vmem:[#allocation8] sm:$0xff] }
  0x25   :  { %310 = vmatmul.msk.f32.vlgmr.msra.gmra.mxu1 %vm108_vm0, %v82_v20  ;;  %223 = vmatpush.msrb.mxu0 %v202_v12  ;;  %v204_v50 = vld [vmem:[#allocation8 + $0x88] sm:$0xff]  ;;  %v203_v51 = vld [vmem:[#allocation8 + $0x80] sm:$0xff]  ;;  %v102_v52 = vld [vmem:[#allocation7] sm:$0x3] }
  0x26   :  { %252 = vmatpush.msrb.mxu1 %v218_v13  ;;  %335 = vmatpush.msra.mxu3 %v213_v29  ;;  %v104_v53 = vperm.slane %v102_v52, 0  ;;  %v105_v54 = vperm.slane %v102_v52, 1  ;;  %v355_v15 = vld [vmem:[%s575_s4] ss:$0 sm:$0xff] }
  0x27   :  { %224 = vmatpush.msrb.mxu0 %v201_v16  ;;  %320 = vmatpush.msra.mxu2 %v196_v30 }
  0x28   :  { %253 = vmatpush.msrb.mxu1 %v217_v17  ;;  %336 = vmatpush.msra.mxu3 %v212_v31 }
  0x29   :  { %225 = vmatpush.msrb.mxu0 %v200_v21  ;;  %321 = vmatpush.msra.mxu2 %v195_v32 }
  0x2a   :  { %254 = vmatpush.msrb.mxu1 %v216_v22  ;;  %337 = vmatpush.msra.mxu3 %v211_v33 }
  0x2b   :  { %226 = vmatpush.msrb.mxu0 %v199_v23  ;;  %322 = vmatpush.msra.mxu2 %v194_v35 }
  0x2c   :  { %255 = vmatpush.msrb.mxu1 %v215_v24  ;;  %307 = vmatmul.msk.f32.gmra.mxu0 %vm108_vm0, %v83_v27 }
  0x2d   :  { %311 = vmatmul.msk.f32.gmra.mxu1 %vm108_vm0, %v83_v27  ;;  %227 = vmatpush.msrb.mxu0 %v198_v25 }
  0x2e   :  { %256 = vmatpush.msrb.mxu1 %v214_v26  ;;  %338 = vmatpush.msra.mxu3 %v210_v36 }
  0x2f   :  { %228 = vmatpush.msrb.mxu0 %v197_v28  ;;  %323 = vmatpush.msra.mxu2 %v193_v37 }
  0x30   :  { %257 = vmatpush.msrb.mxu1 %v213_v29  ;;  %339 = vmatpush.msra.mxu3 %v209_v38 }
  0x31   :  { %229 = vmatpush.msrb.mxu0 %v196_v30  ;;  %324 = vmatpush.msra.mxu2 %v192_v39 }
  0x32   :  { %258 = vmatpush.msrb.mxu1 %v212_v31  ;;  %340 = vmatpush.msra.mxu3 %v208_v42 }
  0x33   :  { %230 = vmatpush.msrb.mxu0 %v195_v32  ;;  %325 = vmatpush.msra.mxu2 %v191_v41 }
  0x34   :  { %259 = vmatpush.msrb.mxu1 %v211_v33  ;;  %308 = vmatmul.msk.f32.gmra.mxu0 %vm108_vm0, %v84_v34 }
  0x35   :  { %312 = vmatmul.msk.f32.gmra.mxu1 %vm108_vm0, %v84_v34  ;;  %231 = vmatpush.msrb.mxu0 %v194_v35 }
  0x36   :  { %260 = vmatpush.msrb.mxu1 %v210_v36  ;;  %326 = vmatpush.msra.mxu2 %v190_v43 }
  0x37   :  { %232 = vmatpush.msrb.mxu0 %v193_v37  ;;  %341 = vmatpush.msra.mxu3 %v207_v44 }
  0x38   :  { %261 = vmatpush.msrb.mxu1 %v209_v38  ;;  %327 = vmatpush.msra.mxu2 %v189_v45 }
  0x39   :  { %233 = vmatpush.msrb.mxu0 %v192_v39  ;;  %342 = vmatpush.msra.mxu3 %v206_v46 }
  0x3a   :  { %262 = vmatpush.msrb.mxu1 %v208_v42  ;;  %328 = vmatpush.msra.mxu2 %v188_v47 }
  0x3b   :  { %234 = vmatpush.msrb.mxu0 %v191_v41  ;;  %343 = vmatpush.msra.mxu3 %v205_v48 }
  0x3c   :  { %309 = vmatmul.msk.f32.gmra.mxu0 %vm108_vm0, %v85_v40  ;;  %263 = vmatpush.msrb.mxu1 %v207_v44 }
  0x3d   :  { %313 = vmatmul.msk.f32.gmra.mxu1 %vm108_vm0, %v85_v40  ;;  %235 = vmatpush.msrb.mxu0 %v190_v43 }
  0x3e   :  { %264 = vmatpush.msrb.mxu1 %v206_v46  ;;  %329 = vmatpush.msra.mxu2 %v187_v49 }
  0x3f   :  { %236 = vmatpush.msrb.mxu0 %v189_v45  ;;  %344 = vmatpush.msra.mxu3 %v204_v50 }
  0x40   :  { %265 = vmatpush.msrb.mxu1 %v205_v48 }
  0x41   :  { %237 = vmatpush.msrb.mxu0 %v188_v47  ;;  %345 = vmatpush.msra.mxu3 %v203_v51 }
  0x42   :  { %266 = vmatpush.msrb.mxu1 %v204_v50 }
  0x43   :  { %238 = vmatpush.msrb.mxu0 %v187_v49 }
  0x44   :  { %267 = vmatpush.msrb.mxu1 %v203_v51 }
  0xa1   :  { %v138_v55 = vpop.f32.mrf.mxu0 }
  0xa2   :  { %v167_v56 = vpop.f32.mrf.mxu1  ;;  %v139_v57 = vadd.f32 %v138_v55, %v104_v53 }
  0xa3   :  { %v168_v58 = vadd.f32 %v167_v56, %v105_v54 }
  0xa4   :  { %356 = vtanh.f32 %v139_v57 }
  0xa5   :  { %358 = vtanh.f32 %v168_v58 }
  0xa9   :  { %v141_v59 = vpop.f32.mrf.mxu0 }
  0xaa   :  { %v170_v60 = vpop.f32.mrf.mxu1  ;;  %v357_v61 = vpop.eup %356  ;;  %v142_v62 = vadd.f32 %v141_v59, %v104_v53 }
  0xab   :  { %v171_v63 = vadd.f32 %v170_v60, %v105_v54  ;;  %v359_v0 = vpop.eup %358  ;;  %239 = vmatmul.f32.vlgmr.msrb.gmra.mxu0 %v357_v61 }
  0xac   :  { %360 = vtanh.f32 %v142_v62  ;;  %268 = vmatmul.f32.vlgmr.msrb.gmra.mxu1 %v359_v0 }
  0xad   :  { %362 = vtanh.f32 %v171_v63 }
  0xb1   :  { %v144_v1 = vpop.f32.mrf.mxu0 }
  0xb2   :  { %v173_v2 = vpop.f32.mrf.mxu1  ;;  %v361_v3 = vpop.eup %360  ;;  %v145_v4 = vadd.f32 %v144_v1, %v104_v53 }
  0xb3   :  { %v174_v5 = vadd.f32 %v173_v2, %v105_v54  ;;  %v363_v6 = vpop.eup %362  ;;  %242 = vmatmul.f32.vlgmr.msra.gmra.mxu2 %v361_v3 }
  0xb4   :  { %364 = vtanh.f32 %v145_v4  ;;  %271 = vmatmul.f32.vlgmr.msra.gmra.mxu3 %v363_v6 }
  0xb5   :  { %366 = vtanh.f32 %v174_v5 }
  0xb9   :  { %v147_v7 = vpop.f32.mrf.mxu0 }
  0xba   :  { %v176_v8 = vpop.f32.mrf.mxu1  ;;  %v365_v9 = vpop.eup %364  ;;  %v148_v10 = vadd.f32 %v147_v7, %v104_v53 }
  0xbb   :  { %v177_v11 = vadd.f32 %v176_v8, %v105_v54  ;;  %v367_v12 = vpop.eup %366  ;;  %245 = vmatmul.f32.gmra.mxu2 %v365_v9 }
  0xbc   :  { %368 = vtanh.f32 %v148_v10  ;;  %274 = vmatmul.f32.gmra.mxu3 %v367_v12 }
  0xbd   :  { %370 = vtanh.f32 %v177_v11 }
  0xc2   :  { %v369_v13 = vpop.eup %368 }
  0xc3   :  { %v371_v14 = vpop.eup %370  ;;  %248 = vmatmul.f32.gmra.mxu2 %v369_v13 }
  0xc4   :  { %277 = vmatmul.f32.gmra.mxu3 %v371_v14 }
 0x128   :  { %v240_v16 = vpop.f32.mrf.mxu0 }
 0x129   :  { %v241_v17 = vadd.f32 %v355_v15, %v240_v16  ;;  %v269_v18 = vpop.f32.mrf.mxu1 }
 0x12b   :  { %v270_v19 = vadd.f32 %v269_v18, %v241_v17 }
 0x12d   :  { %281 = vst [vmem:[#allocation10] sm:$0xff] %v270_v19 }
 0x136   :  { %v243_v20 = vpop.f32.mrf.mxu2 }
 0x137   :  { %v244_v21 = vadd.f32 %v355_v15, %v243_v20  ;;  %v272_v22 = vpop.f32.mrf.mxu3 }
 0x139   :  { %v273_v23 = vadd.f32 %v272_v22, %v244_v21 }
 0x13b   :  { %282 = vst [vmem:[#allocation10 + $0x10] sm:$0xff] %v273_v23 }
 0x13e   :  { %v246_v24 = vpop.f32.mrf.mxu2 }
 0x13f   :  { %v247_v25 = vadd.f32 %v355_v15, %v246_v24  ;;  %v275_v26 = vpop.f32.mrf.mxu3 }
 0x141   :  { %v276_v27 = vadd.f32 %v275_v26, %v247_v25 }
 0x143   :  { %283 = vst [vmem:[#allocation10 + $0x8] sm:$0xff] %v276_v27 }
 0x146   :  { %v249_v28 = vpop.f32.mrf.mxu2 }
 0x147   :  { %v250_v29 = vadd.f32 %v355_v15, %v249_v28  ;;  %v278_v30 = vpop.f32.mrf.mxu3 }
 0x149   :  { %v279_v31 = vadd.f32 %v278_v30, %v250_v29 }
 0x14b   :  { %284 = vst [vmem:[#allocation10 + $0x18] sm:$0xff] %v279_v31 }
 0x14c   :  { %297 = dma.vmem_to_hbm [thread:$0]  %s290_s16, 512, %s292_s18, [#allocation4], %s501_s26, %s501_s26, %s502_s27  }
 0x14d   :  { %498 = dma.done.wait [#allocation4], 512  }
 0x14e   :  { %499 = vsyncadd [#allocation4], 4294966784 }
 0x14f   :  { %302 = vsyncpa [#allocation3], 1 }
 0x150   :  { %303 = vsyncpa [#allocation6], 1 }
 0x151   :  { %304 = vsyncpa [#allocation9], 1 }
 0x152   :  { %305 = vsyncpa [#allocation4], 1 }

</bundles_post_ra>
